<compile_context>
chip_gen: v7x
topology: tpu7x:2x2x1
jax: 0.10.0
libtpu: 0.0.40
codegen_flags: <defaults>
</compile_context>

<pallas_src>
import functools

import jax
import jax.numpy as jnp
from jax.experimental import pallas as pl
from jax.experimental.pallas import tpu as pltpu


# Non-zero taps of the fixed kernels, as (offset, weight).  The same list
# applies to the vertical kernel (row offsets, centre column) and the
# horizontal kernel (column offsets, centre row).
_TAPS = {
    3: ((-1, -1.0), (1, 1.0)),
    5: ((-2, -10.0), (-1, -1.0), (1, 1.0), (2, 10.0)),
    7: ((-3, -1.0), (-2, -10.0), (-1, -1.0), (1, 1.0), (2, 10.0), (3, 1.0)),
}


def _grad_kernel(x_ref, o_ref, *, taps, pad, H, W):
    """One grid step: one (H, W) plane -> one gradient-magnitude plane.

    x_ref : (1, 1, H, W) input plane (native dtype, cast to f32 here)
    o_ref : (1, 1, H, W) float32 output plane
    """
    x = x_ref[0, 0].astype(jnp.float32)                    # (H, W)

    # Zero-pad once (rows for vertical taps, columns for horizontal taps).
    zr = jnp.zeros((pad, W), jnp.float32)
    zc = jnp.zeros((H, pad), jnp.float32)
    xv = jnp.concatenate([zr, x, zr], axis=0)              # (H + 2*pad, W)
    xh = jnp.concatenate([zc, x, zc], axis=1)              # (H, W + 2*pad)

    acc_v = jnp.zeros((H, W), jnp.float32)
    acc_h = jnp.zeros((H, W), jnp.float32)
    for d, w in taps:
        # out_v[i, j] += w * x[i + d, j]   (zero outside)  -> sublane shift
        acc_v = acc_v + w * xv[pad + d: pad + d + H, :]
        # out_h[i, j] += w * x[i, j + d]   (zero outside)  -> lane shift
        acc_h = acc_h + w * xh[:, pad + d: pad + d + W]

    o_ref[0, 0] = jnp.sqrt(acc_v * acc_v + acc_h * acc_h + 1e-6).astype(o_ref.dtype)


def get_gradient(x, *, num_species: int = 2, kernel_size: int = 5):
    """Pallas equivalent of Get_gradient.forward. x: (N, C, H, W), C >= num_species."""
    if kernel_size not in _TAPS:
        raise ValueError("kernel_size must be 3, 5, or 7")
    taps = _TAPS[kernel_size]
    pad = kernel_size // 2

    N, C, H, W = x.shape
    assert C >= num_species
    n_planes = N * num_species

    # Advisory cost estimate: memory-bound stencil, ~ (4*taps + 4) flops and
    # one sqrt per output pixel; bytes = read planes (native dtype) + f32 write.
    in_itemsize = jnp.dtype(x.dtype).itemsize
    cost = pl.CostEstimate(
        flops=(4 * len(taps) + 4) * n_planes * H * W,
        transcendentals=n_planes * H * W,
        bytes_accessed=n_planes * H * W * (in_itemsize + 4),
    )

    # Per-step VMEM: double-buffered input + output blocks plus a modest f32
    # working set.  Only raise the scoped-VMEM limit when a plane is large.
    work_bytes = H * W * (2 * in_itemsize + 2 * 4 + 12 * 4)
    vmem_limit = min(work_bytes, 48 << 20) if work_bytes > (16 << 20) else None

    out = pl.pallas_call(
        functools.partial(_grad_kernel, taps=taps, pad=pad, H=H, W=W),
        out_shape=jax.ShapeDtypeStruct((N, num_species, H, W), jnp.float32),
        grid=(N, num_species),
        in_specs=[
            # Select plane (n, c) straight out of the original NCHW tensor: no
            # wrapper-side slice / cast / reshape copy in HBM.
            pl.BlockSpec((1, 1, H, W), lambda n, c: (n, c, 0, 0)),
        ],
        out_specs=pl.BlockSpec((1, 1, H, W), lambda n, c: (n, c, 0, 0)),
        compiler_params=pltpu.CompilerParams(
            dimension_semantics=("parallel", "parallel"),
            vmem_limit_bytes=vmem_limit,
        ),
        cost_estimate=cost,
    )(x)

    return out


# ----------------------------------------------------------------------------
# Pure-JAX reference (dense lax conv), for numerical sanity checking only.
# ----------------------------------------------------------------------------
def _make_kernels(kernel_size: int):
    if kernel_size == 3:
        kv = [[0, -1, 0], [0, 0, 0], [0, 1, 0]]
        kh = [[0, 0, 0], [-1, 0, 1], [0, 0, 0]]
    elif kernel_size == 5:
        kv = [[0, 0, -10, 0, 0], [0, 0, -1, 0, 0], [0, 0, 0, 0, 0],
              [0, 0, 1, 0, 0], [0, 0, 10, 0, 0]]
        kh = [[0, 0, 0, 0, 0], [0, 0, 0, 0, 0], [-10, -1, 0, 1, 10],
              [0, 0, 0, 0, 0], [0, 0, 0, 0, 0]]
    else:  # 7
        kv = [[0, 0, 0, -1, 0, 0, 0], [0, 0, 0, -10, 0, 0, 0],
              [0, 0, 0, -1, 0, 0, 0], [0, 0, 0, 0, 0, 0, 0],
              [0, 0, 0, 1, 0, 0, 0], [0, 0, 0, 10, 0, 0, 0],
              [0, 0, 0, 1, 0, 0, 0]]
        kh = [[0, 0, 0, 0, 0, 0, 0], [0, 0, 0, 0, 0, 0, 0],
              [0, 0, 0, 0, 0, 0, 0], [-1, -10, -1, 0, 1, 10, 1],
              [0, 0, 0, 0, 0, 0, 0], [0, 0, 0, 0, 0, 0, 0],
              [0, 0, 0, 0, 0, 0, 0]]
    return jnp.asarray(kv, jnp.float32), jnp.asarray(kh, jnp.float32)


def _reference(x, *, num_species: int = 2, kernel_size: int = 5):
    wv, wh = _make_kernels(kernel_size)
    pad = kernel_size // 2
    outs = []
    for c in range(num_species):
        xc = x[:, c:c + 1].astype(jnp.float32)  # (N,1,H,W)
        dn = jax.lax.conv_dimension_numbers(
            xc.shape, (1, 1, kernel_size, kernel_size), ("NCHW", "OIHW", "NCHW"))
        xv = jax.lax.conv_general_dilated(xc, wv[None, None], (1, 1),
                                          [(pad, pad), (pad, pad)],
                                          dimension_numbers=dn)
        xh = jax.lax.conv_general_dilated(xc, wh[None, None], (1, 1),
                                          [(pad, pad), (pad, pad)],
                                          dimension_numbers=dn)
        outs.append(jnp.sqrt(xv * xv + xh * xh + 1e-6))
    return jnp.concatenate(outs, axis=1)


if __name__ == "__main__":
    key = jax.random.PRNGKey(0)
    # num_species=2 -> forward uses channels 0 and 1 of an NCHW input; extra
    # channels are simply never touched by the grid.
    x = jax.random.normal(key, (2, 4, 16, 16), dtype=jnp.float32)

    grad = get_gradient(x, num_species=2, kernel_size=5)
    grad = jax.block_until_ready(grad)

    ref = _reference(x, num_species=2, kernel_size=5)
    assert grad.shape == ref.shape == (2, 2, 16, 16)
    assert jnp.allclose(grad, ref, atol=1e-4, rtol=1e-4)

    print("KERNEL_OK")
</pallas_src>

<mosaic_0001>
module attributes {stable_mosaic.version = 11 : i64} {
  func.func @_grad_kernel(%arg0: i32, %arg1: i32, %arg2: memref<1x1x16x16xf32, #tpu.memory_space<vmem>>, %arg3: memref<1x1x16x16xf32, #tpu.memory_space<vmem>>) attributes {dimension_semantics = [#tpu.dimension_semantics<parallel>, #tpu.dimension_semantics<parallel>], iteration_bounds = array<i64: 2, 2>, scalar_prefetch = 0 : i64, scratch_operands = 0 : i64, tpu.core_type = #tpu.core_type<tc>, window_params = [{transform_indices = @transform_0, window_bounds = array<i64: 1, 1, 16, 16>}, {transform_indices = @transform_1, window_bounds = array<i64: 1, 1, 16, 16>}]} {
    %c0 = arith.constant 0 : index
    %c0_0 = arith.constant 0 : index
    %c0_1 = arith.constant 0 : index
    %c0_2 = arith.constant 0 : index
    %0 = vector.load %arg2[%c0, %c0_0, %c0_1, %c0_2] : memref<1x1x16x16xf32, #tpu.memory_space<vmem>>, vector<1x1x16x16xf32>
    %1 = vector.shape_cast %0 : vector<1x1x16x16xf32> to vector<16x16xf32>
    %cst = arith.constant 0.000000e+00 : f32
    %2 = vector.broadcast %cst : f32 to vector<2x16xf32>
    %cst_3 = arith.constant 0.000000e+00 : f32
    %3 = vector.broadcast %cst_3 : f32 to vector<16x2xf32>
    %4 = tpu.concatenate %2, %1, %2 in 0 : vector<2x16xf32>, vector<16x16xf32>, vector<2x16xf32> -> vector<20x16xf32>
    %5 = tpu.concatenate %3, %1, %3 in 1 : vector<16x2xf32>, vector<16x16xf32>, vector<16x2xf32> -> vector<16x20xf32>
    %cst_4 = arith.constant 0.000000e+00 : f32
    %6 = vector.broadcast %cst_4 : f32 to vector<16x16xf32>
    %cst_5 = arith.constant 0.000000e+00 : f32
    %7 = vector.broadcast %cst_5 : f32 to vector<16x16xf32>
    %8 = vector.extract_strided_slice %4 {offsets = [0, 0], sizes = [16, 16], strides = [1, 1]} : vector<20x16xf32> to vector<16x16xf32>
    %cst_6 = arith.constant -1.000000e+01 : f32
    %9 = vector.broadcast %cst_6 : f32 to vector<16x16xf32>
    %10 = arith.mulf %9, %8 : vector<16x16xf32>
    %11 = arith.addf %6, %10 : vector<16x16xf32>
    %12 = vector.extract_strided_slice %5 {offsets = [0, 0], sizes = [16, 16], strides = [1, 1]} : vector<16x20xf32> to vector<16x16xf32>
    %cst_7 = arith.constant -1.000000e+01 : f32
    %13 = vector.broadcast %cst_7 : f32 to vector<16x16xf32>
    %14 = arith.mulf %13, %12 : vector<16x16xf32>
    %15 = arith.addf %7, %14 : vector<16x16xf32>
    %16 = vector.extract_strided_slice %4 {offsets = [1, 0], sizes = [16, 16], strides = [1, 1]} : vector<20x16xf32> to vector<16x16xf32>
    %cst_8 = arith.constant -1.000000e+00 : f32
    %17 = vector.broadcast %cst_8 : f32 to vector<16x16xf32>
    %18 = arith.mulf %17, %16 : vector<16x16xf32>
    %19 = arith.addf %11, %18 : vector<16x16xf32>
    %20 = vector.extract_strided_slice %5 {offsets = [0, 1], sizes = [16, 16], strides = [1, 1]} : vector<16x20xf32> to vector<16x16xf32>
    %cst_9 = arith.constant -1.000000e+00 : f32
    %21 = vector.broadcast %cst_9 : f32 to vector<16x16xf32>
    %22 = arith.mulf %21, %20 : vector<16x16xf32>
    %23 = arith.addf %15, %22 : vector<16x16xf32>
    %24 = vector.extract_strided_slice %4 {offsets = [3, 0], sizes = [16, 16], strides = [1, 1]} : vector<20x16xf32> to vector<16x16xf32>
    %cst_10 = arith.constant 1.000000e+00 : f32
    %25 = vector.broadcast %cst_10 : f32 to vector<16x16xf32>
    %26 = arith.mulf %25, %24 : vector<16x16xf32>
    %27 = arith.addf %19, %26 : vector<16x16xf32>
    %28 = vector.extract_strided_slice %5 {offsets = [0, 3], sizes = [16, 16], strides = [1, 1]} : vector<16x20xf32> to vector<16x16xf32>
    %cst_11 = arith.constant 1.000000e+00 : f32
    %29 = vector.broadcast %cst_11 : f32 to vector<16x16xf32>
    %30 = arith.mulf %29, %28 : vector<16x16xf32>
    %31 = arith.addf %23, %30 : vector<16x16xf32>
    %32 = vector.extract_strided_slice %4 {offsets = [4, 0], sizes = [16, 16], strides = [1, 1]} : vector<20x16xf32> to vector<16x16xf32>
    %cst_12 = arith.constant 1.000000e+01 : f32
    %33 = vector.broadcast %cst_12 : f32 to vector<16x16xf32>
    %34 = arith.mulf %33, %32 : vector<16x16xf32>
    %35 = arith.addf %27, %34 : vector<16x16xf32>
    %36 = vector.extract_strided_slice %5 {offsets = [0, 4], sizes = [16, 16], strides = [1, 1]} : vector<16x20xf32> to vector<16x16xf32>
    %cst_13 = arith.constant 1.000000e+01 : f32
    %37 = vector.broadcast %cst_13 : f32 to vector<16x16xf32>
    %38 = arith.mulf %37, %36 : vector<16x16xf32>
    %39 = arith.addf %31, %38 : vector<16x16xf32>
    %40 = arith.mulf %35, %35 : vector<16x16xf32>
    %41 = arith.mulf %39, %39 : vector<16x16xf32>
    %42 = arith.addf %40, %41 : vector<16x16xf32>
    %cst_14 = arith.constant 9.99999997E-7 : f32
    %43 = vector.broadcast %cst_14 : f32 to vector<16x16xf32>
    %44 = arith.addf %42, %43 : vector<16x16xf32>
    %45 = math.sqrt %44 : vector<16x16xf32>
    %c0_15 = arith.constant 0 : index
    %c0_16 = arith.constant 0 : index
    %c0_17 = arith.constant 0 : index
    %c0_18 = arith.constant 0 : index
    %46 = vector.load %arg3[%c0_15, %c0_16, %c0_17, %c0_18] : memref<1x1x16x16xf32, #tpu.memory_space<vmem>>, vector<1x1x16x16xf32>
    %47 = vector.shape_cast %46 : vector<1x1x16x16xf32> to vector<16x16xf32>
    %48 = vector.shape_cast %45 : vector<16x16xf32> to vector<1x1x16x16xf32>
    tpu.vector_store %arg3[%c0_15, %c0_16, %c0_17, %c0_18], %48 {strides = array<i32>} : memref<1x1x16x16xf32, #tpu.memory_space<vmem>>, vector<1x1x16x16xf32>,
    return
  }
  func.func @transform_0(%arg0: i32, %arg1: i32) -> (i32, i32, i32, i32) {
    %c0_i32 = arith.constant 0 : i32
    %c0_i32_0 = arith.constant 0 : i32
    %c0_i32_1 = arith.constant 0 : i32
    return %arg0, %arg1, %c0_i32, %c0_i32_0 : i32, i32, i32, i32
  }
  func.func @transform_1(%arg0: i32, %arg1: i32) -> (i32, i32, i32, i32) {
    %c0_i32 = arith.constant 0 : i32
    %c0_i32_0 = arith.constant 0 : i32
    %c0_i32_1 = arith.constant 0 : i32
    return %arg0, %arg1, %c0_i32, %c0_i32_0 : i32, i32, i32, i32
  }
}

</mosaic_0001>

<bundles_post_ra>
// kernel: tpu_custom_call.1
= control target key start
LH: loop header
LB: loop body
LE: loop exit
PB: predicated region body
PF: predicated region fallthrough
CT: control target
= control target key end

     0   :  { %6 = vsyncpa [#allocation3], 0  ;;  %s863_s0 = inlined_call_operand.hbm [shape: f32[2,4,16,16], index: 0, kind: input, shape index: {}]   ;;  %s864_s1 = inlined_call_operand.hbm [shape: f32[2,2,16,16], index: 1, kind: output, shape index: {}]  }
   0x1   :  { %8 = vsyncpa [#allocation3 + $0x1], 0 }
   0x2   :  { %9 = vsyncpa [#allocation4], 0 }
   0x3   :  { %11 = vsyncpa [#allocation4 + $0x1], 0  ;;  %s652_s6 = smov 0   ;;  %s654_s7 = smov 0  }
   0x4   :  { %s656_s8 = smov 0   ;;  %s658_s9 = smov 0  }
   0x5   :  { %s660_s10 = smov 0   ;;  %s662_s11 = smov 0  }
   0x6   :  { %s664_s12 = smov 0   ;;  %s666_s13 = smov 0  }
   0x7 LB: > { %s395_s14 = sadd.s32 4294967295, %s630_s13   ;;  %s396_s15 = sadd.s32 4294967294, %s630_s13   ;;  %s630_s13 = sphi %s666_s13, %s17_s13   ;;  %s626_s12 = sphi %s664_s12, %s879_s12   ;;  %s622_s11 = sphi %s662_s11, %s878_s11   ;;  %s618_s10 = sphi %s660_s10, %s877_s10   ;;  %s614_s9 = sphi %s658_s9, %s876_s9   ;;  %s610_s8 = sphi %s656_s8, %s875_s8   ;;  %s606_s7 = sphi %s654_s7, %s874_s7   ;;  %s602_s6 = sphi %s652_s6, %s873_s6  }
   0x8   : > { %s26_s16 = sadd.s32 1, %s622_s11  ;;  %s29_s17 = sadd.s32 1, %s626_s12 }
   0x9   : > { %p27_p0 = scmp.ge.s32.totalorder %s26_s16, 2  ;;  %s38_s18 = sadd.s32 1, %s610_s8 }
   0xa   : > { %p45_p1 = scmp.ne.s32.totalorder %s610_s8, %s606_s7  ;;  %p46_p2 = scmp.eq.s32.totalorder %s630_s13, 0 }
   0xb   : > { %s881_s16 = smov (%p27_p0, %s26_s16), 0  ;;  %s883_s17 = smov (!%p27_p0, %s29_s17), %s626_s12 }
   0xc   : > { %s34_s19 = ssub.s32 %s622_s11, %s881_s16  ;;  %p705_p3 = por %p46_p2, %p45_p1 }
   0xd   : > { %p31_p4 = scmp.ge.s32.totalorder %s883_s17, 2  ;;  %p51_p5 = scmp.ne.s32.totalorder %s606_s7, %s602_s6 }
   0xe   : > { %p52_p6 = scmp.eq.s32.totalorder %s395_s14, 0  ;;  %p77_p7 = scmp.eq.s32.totalorder %s395_s14, 3 }
   0xf   : > { %s885_s17 = smov (%p31_p4, %s883_s17), 0  ;;  %p83_p10 = scmp.eq.s32.totalorder %s396_s15, 3 }
  0x10   : > { %p713_p8 = por %p52_p6, %p51_p5  ;;  %p717_p9 = por %p77_p7, %p45_p1 }
  0x11   : > { %s33_s23 = ssub.s32 %s626_s12, %s885_s17  ;;  %p723_p12 = por %p83_p10, %p51_p5 }
  0x12   : > { %s868_s22 = scalar_select %p717_p9, 1, 0 }
  0x13   : > { %s35_s24 = sor.u32 %s34_s19, %s33_s23  ;;  %p424_p13 = scmp.lt.s32.totalorder %s630_s13, 4 }
  0x14   : > { %p36_p11 = scmp.eq.s32.totalorder %s35_s24, 0  ;;  %s103_s26 = sand.u32 1, %s610_s8  }
  0x15   : > { %s869_s25 = scalar_select %p723_p12, 1, 0 }
  0x16   : > { %s730_s27 = scalar_select %p36_p11, %s610_s8, %s38_s18  }
  0x17   : > { %s399_s28 = sshll.u32 %s103_s26, 4  ;;  %s400_s29 = sshll.u32 %s622_s11, 1 }
  0x18   : > { %s401_s30 = sshll.u32 %s626_s12, 3  ;;  %s107_s2 = scalar_lea.vmem [#allocation2], %s399_s28 }
  0x19   : > { %s116_s3 = sshll.u32 %s107_s2, 4  ;;  %s113_s4 = sadd.s32 %s401_s30, %s400_s29  ;;  %s734_s3 = int_to_ptr.vmem [resolvable:$true] %s116_s3 }
  0x1a   : > { %s402_s5 = sshll.u32 %s113_s4, 7  ;;  %p738_p0 = pnand %p424_p13, %p705_p3 }
  0x1b   : > { %s745_s18 = scalar_lea.hbm %s863_s0, %s402_s5  ;;  %s747_s23 = scalar_lea.sflag [#allocation3], %s103_s26 }
  0x1c   : > { %s502_s24 = scalar_lea.hbm %s745_s18, 256  ;;  %p504_p2 = pneg %p738_p0 }
  0x1d   : > { %p503_p1 = scmp.ne.s32.totalorder %s745_s18, %s502_s24  ;;  %s507_s29 = scalar_lea.hbm %s863_s0, 2048 }
  0x1e   : > { %p508_p5 = scmp.lt.u32.totalorder %s745_s18, %s863_s0  ;;  %p509_p6 = scmp.lt.u32.totalorder %s507_s29, %s502_s24 }
  0x1f   : > { %p505_p3 = pnand %p504_p2, %p503_p1  ;;  %p511_p10 = scmp.lt.u32.totalorder %s502_s24, %s745_s18 }
  0x20   : > { %p510_p7 = por %p509_p6, %p508_p5 }
  0x21   : > { %p506_p4 = pneg %p505_p3 }
  0x22   : > { %p512_p11 = por %p511_p10, %p510_p7 }
  0x24   : > { %p513_p13 = pnand %p512_p11, %p506_p4 }
  0x26   : > { %516 = shalt.err (!%p513_p13)
}
  0x27   : > { %s517_s26 = scalar_lea.vmem %s734_s3, 256  ;;  %s632_s4 = smov [#allocation2]  }
  0x28   : > { %p518_p1 = scmp.ne.s32.totalorder %s734_s3, %s517_s26  ;;  %s522_s5 = sshll.u32 %s632_s4, 4  ;;  %s523_s5 = int_to_ptr.vmem [resolvable:$false] %s522_s5 }
  0x29   : > { %s524_s15 = scalar_lea.vmem %s523_s5, 512  ;;  %p525_p9 = scmp.lt.s32.totalorder %s734_s3, %s523_s5 }
  0x2a   : > { %p520_p3 = pnand %p518_p1, %p504_p2  ;;  %p526_p5 = scmp.lt.s32.totalorder %s524_s15, %s517_s26 }
  0x2c   : > { %p521_p12 = pneg %p520_p3  ;;  %p527_p6 = por %p526_p5, %p525_p9 }
  0x2e   : > { %p528_p7 = pnand %p527_p6, %p521_p12 }
  0x30   : > { %531 = shalt.err (!%p528_p7)
}
  0x31   : > { %s633_s19 = smov 128   ;;  %s634_s24 = smov 8  }
  0x32   : > { %419 = dma.hbm_to_vmem [thread:$0]  (!%p738_p0), %s745_s18, 256, %s734_s3, %s747_s23, %s633_s19, %s633_s19, %s634_s24  }
  0x33   : > { %p403_p2 = scmp.ge.s32.totalorder %s630_s13, 1  ;;  %p124_p4 = scmp.lt.s32.totalorder %s630_s13, 5 }
  0x35   : > { %p125_p10 = pnand %p403_p2, %p124_p4 }
  0x36   : > { %s778_s20 = sand.u32 (!%p125_p10), 1, %s606_s7  }
  0x37   : > { %128 = sbr.rel (%p125_p10) target bundleno = 350 (0x15e), region = 24  ;;  %s404_s28 = sshll.u32 (!%p125_p10), %s778_s20, 4 }
  0x38   : > { %s131_s29 = scalar_lea.sflag (!%p125_p10), [#allocation3], %s778_s20  ;;  %s134_s30 = scalar_lea.vmem (!%p125_p10), [#allocation2], %s404_s28 }
  0x3e   : > { %593 = dma.done.wait (%p713_p8), %s131_s29, 256  }
  0x3f   : > { %595 = vsyncadd (%p713_p8), %s131_s29, 4294967040  ;;  %v153_v0 = vld [vmem:[%s134_s30] sm:$0xff]  ;;  %vm157_vm0 = vcmask 1041408   ;;  %v154_v1 = vld [vmem:[%s134_s30 + $0x8] sm:$0xff]  ;;  %s635_s3 = smov 2   ;;  %vm192_vm1 = vcmask 1046528  }
  0x40   : > { %166 = vrot.lane.b32.xlu0 %v153_v0, %s635_s3  ;;  %v158_v2 = vrot.slane %v153_v0, 6  ;;  %v159_v3 = vrot.slane %v154_v1, 6  ;;  %vm216_vm2 = vcmask 1044480   ;;  %vm242_vm3 = vcmask 1043456   ;;  %s636_s21 = smov 125   ;;  %s637_s14 = smov 124  }
  0x41   : > { %vm172_vm4 = vcmask 15360   ;;  %vm175_vm5 = vcmask 146432   ;;  %s638_s18 = smov 127   ;;  %s407_s23 = sshll.u32 %s614_s9, 1  ;;  %vm286_vm7 = vcmask 130048  }
  0x42   : > { %v160_v4 = vsel %vm157_vm0, %v158_v2, %v159_v3  ;;  %v164_v5 = vsel %vm157_vm0, 0.0, %v158_v2  ;;  %v165_v8 = vsel %vm157_vm0, %v159_v3, 0.0  ;;  %s408_s2 = sshll.u32 %s618_s10, 2  ;;  %s152_s5 = scalar_lea.vmem [#allocation5], %s404_s28 }
  0x43   : > { %v186_v6 = vmul.f32 -1.0, %v164_v5  ;;  %v187_v7 = vmul.f32 -1.0, %v160_v4  ;;  %v236_v9 = vmul.f32 10.0, %v164_v5  ;;  %v237_v10 = vmul.f32 10.0, %v160_v4  ;;  %s302_s26 = sadd.s32 %s408_s2, %s407_s23  ;;  %s305_s15 = sshll.u32 %s152_s5, 4  ;;  %s808_s15 = int_to_ptr.vmem [resolvable:$true] %s305_s15 }
  0x44   : > { %168 = vrot.lane.b32.xlu0 %v154_v1, %s635_s3  ;;  %v188_v12 = vmul.f32 -1.0, %v165_v8  ;;  %v178_v14 = vmul.f32 -10.0, %v164_v5  ;;  %v217_v15 = vrot.slane %v164_v5, 3  ;;  %v218_v16 = vrot.slane %v160_v4, 3  ;;  %s409_s4 = sshll.u32 %s302_s26, 7  ;;  %s290_s24 = scalar_lea.sflag [#allocation4], %s778_s20 }
  0x45   : > { %v193_v11 = vrot.slane %v186_v6, 1  ;;  %v194_v13 = vrot.slane %v187_v7, 1  ;;  %v243_v17 = vrot.slane %v236_v9, 4  ;;  %v244_v18 = vrot.slane %v237_v10, 4  ;;  %s806_s19 = scalar_lea.hbm %s864_s1, %s409_s4  ;;  %s532_s28 = scalar_lea.vmem %s808_s15, 256 }
  0x46   : > { %v196_v19 = vrot.slane %v188_v12, 1  ;;  %v238_v20 = vmul.f32 10.0, %v165_v8  ;;  %v179_v22 = vmul.f32 -10.0, %v160_v4  ;;  %v219_v24 = vsel %vm216_vm2, %v217_v15, %v218_v16  ;;  %p533_p8 = scmp.ne.s32.totalorder %s808_s15, %s532_s28  ;;  %p871_p9 = scmp.ne.s32.totalorder %s868_s22, 0 }
  0x47   : > { %v195_v21 = vsel %vm192_vm1, %v193_v11, %v194_v13  ;;  %v220_v25 = vrot.slane %v165_v8, 3  ;;  %v245_v28 = vsel %vm242_vm3, %v243_v17, %v244_v18  ;;  %s639_s29 = smov [#allocation5]  }
  0x48   : > { %v200_v23 = vadd.f32 %v195_v21, %v178_v14  ;;  %v246_v29 = vrot.slane %v238_v20, 4  ;;  %v197_v31 = vsel %vm192_vm1, %v194_v13, %v196_v19  ;;  %p534_p12 = pnand %p533_p8, %p871_p9  ;;  %s536_s30 = sshll.u32 %s639_s29, 4  ;;  %s537_s30 = int_to_ptr.vmem [resolvable:$false] %s536_s30 }
  0x49   : > { %v201_v34 = vadd.f32 %v197_v31, %v179_v22  ;;  %v221_v35 = vsel %vm216_vm2, %v218_v16, %v220_v25  ;;  %s538_s3 = scalar_lea.vmem %s537_s30, 512  ;;  %p539_p11 = scmp.lt.s32.totalorder %s808_s15, %s537_s30 }
  0x4a   : > { %v224_v27 = vadd.f32 %v219_v24, %v200_v23  ;;  %v247_v40 = vsel %vm242_vm3, %v244_v18, %v246_v29  ;;  %p535_p0 = pneg %p534_p12  ;;  %p540_p13 = scmp.lt.s32.totalorder %s538_s3, %s532_s28 }
  0x4b   : > { %v225_v37 = vadd.f32 %v221_v35, %v201_v34 }
  0x4c   : > { %v250_v33 = vadd.f32 %v245_v28, %v224_v27  ;;  %p541_p1 = por %p540_p13, %p539_p11 }
  0x4d   : > { %v251_v42 = vadd.f32 %v247_v40, %v225_v37 }
  0x4e   : > { %v264_v56 = vmul.f32 %v250_v33, %v250_v33  ;;  %p542_p3 = pnand %p541_p1, %p535_p0 }
  0x4f   : > { %v265_v63 = vmul.f32 %v251_v42, %v251_v42 }
  0xb2   : > { %v167_v26 = vpop.permute.xlu0 %166 }
  0xb3   : > { %v173_v30 = vsel %vm172_vm4, 0.0, %v167_v26 }
  0xb4   : > { %v176_v32 = vsel %vm175_vm5, %v173_v30, 0.0 }
  0xb5   : > { %228 = vrot.lane.b32.xlu0 %v176_v32, %s636_s21  ;;  %v252_v39 = vmul.f32 10.0, %v176_v32  ;;  %v202_v43 = vmul.f32 -1.0, %v176_v32  ;;  %v182_v48 = vmul.f32 -10.0, %v176_v32 }
  0xb6   : > { %v169_v36 = vpop.permute.xlu0 %168 }
  0xb7   : > { %v174_v38 = vsel %vm172_vm4, 0.0, %v169_v36 }
  0xb8   : > { %v177_v41 = vsel %vm175_vm5, %v174_v38, 0.0 }
  0xb9   : > { %256 = vrot.lane.b32.xlu0 %v252_v39, %s637_s14  ;;  %230 = vrot.lane.b32.xlu1 %v177_v41, %s636_s21  ;;  %v203_v44 = vmul.f32 -1.0, %v177_v41  ;;  %v253_v45 = vmul.f32 10.0, %v177_v41  ;;  %v183_v52 = vmul.f32 -10.0, %v177_v41 }
  0xbd   : > { %206 = vrot.lane.b32.xlu1 %v202_v43, %s638_s18 }
  0xc1   : > { %208 = vrot.lane.b32.xlu1 %v203_v44, %s638_s18 }
  0xc5   : > { %258 = vrot.lane.b32.xlu1 %v253_v45, %s637_s14 }
 0x127   : > { %v229_v47 = vpop.permute.xlu0 %228 }
 0x12b   : > { %v231_v46 = vpop.permute.xlu1 %230  ;;  %v257_v53 = vpop.permute.xlu0 %256 }
 0x12f   : > { %v207_v49 = vpop.permute.xlu1 %206 }
 0x130   : > { %v212_v50 = vadd.f32 %v207_v49, %v182_v48 }
 0x132   : > { %v234_v51 = vadd.f32 %v229_v47, %v212_v50 }
 0x133   : > { %v209_v54 = vpop.permute.xlu1 %208 }
 0x134   : > { %v262_v55 = vadd.f32 %v257_v53, %v234_v51  ;;  %v213_v57 = vadd.f32 %v209_v54, %v183_v52 }
 0x136   : > { %v266_v58 = vmul.f32 %v262_v55, %v262_v55  ;;  %v235_v59 = vadd.f32 %v231_v46, %v213_v57 }
 0x137   : > { %v259_v60 = vpop.permute.xlu1 %258 }
 0x138   : > { %v268_v61 = vadd.f32 %v266_v58, %v264_v56  ;;  %v263_v62 = vadd.f32 %v259_v60, %v235_v59 }
 0x13a   : > { %v270_v0 = vadd.f32 1e-06, %v268_v61  ;;  %v267_v1 = vmul.f32 %v263_v62, %v263_v62 }
 0x13c   : > { %498 = vrsqrt.f32 %v270_v0  ;;  %v269_v2 = vadd.f32 %v267_v1, %v265_v63  ;;  %vm274_vm6 = vcmp.eq.f32.partialorder %v270_v0, inf  ;;  %v277_v6 = vand.u32 2147483648, %v270_v0 }
 0x13d   : > { %vm276_vm8 = vcmp.eq.f32.partialorder %v270_v0, 0.0 }
 0x13e   : > { %v271_v3 = vadd.f32 1e-06, %v269_v2 }
 0x140   : > { %500 = vrsqrt.f32 %v271_v3  ;;  %vm281_vm9 = vcmp.eq.f32.partialorder %v271_v3, inf  ;;  %v284_v11 = vand.u32 2147483648, %v271_v3  ;;  %vm283_vm10 = vcmp.eq.f32.partialorder %v271_v3, 0.0 }
 0x146   : > { %v499_v4 = vpop.eup %498 }
 0x147   : > { %v273_v5 = vmul.f32 %v499_v4, %v270_v0 }
 0x149   : > { %v275_v7 = vsel %vm274_vm6, %v270_v0, %v273_v5 }
 0x14a   : > { %v501_v8 = vpop.eup %500  ;;  %v278_v9 = vsel %vm276_vm8, %v277_v6, %v275_v7 }
 0x14b   : > { %v280_v10 = vmul.f32 %v501_v8, %v271_v3  ;;  %287 = vst.msk [vmem:[%s152_s5] sm:$0xff] %vm286_vm7, %v278_v9 }
 0x14d   : > { %v282_v12 = vsel %vm281_vm9, %v271_v3, %v280_v10 }
 0x14e   : > { %v285_v13 = vsel %vm283_vm10, %v284_v11, %v282_v12 }
 0x14f   : > { %288 = vst.msk [vmem:[%s152_s5 + $0x8] sm:$0xff] %vm286_vm7, %v285_v13 }
 0x150   : > { %545 = shalt.err (!%p542_p3)
}
 0x151   : > { %s546_s21 = scalar_lea.hbm %s806_s19, 256  ;;  %s550_s23 = scalar_lea.hbm %s864_s1, 1024 }
 0x152   : > { %p547_p5 = scmp.ne.s32.totalorder %s806_s19, %s546_s21  ;;  %p551_p2 = scmp.lt.u32.totalorder %s806_s19, %s864_s1 }
 0x153   : > { %p552_p4 = scmp.lt.u32.totalorder %s550_s23, %s546_s21  ;;  %p554_p8 = scmp.lt.u32.totalorder %s546_s21, %s806_s19 }
 0x154   : > { %p548_p6 = pnand %p547_p5, %p871_p9 }
 0x155   : > { %p553_p10 = por %p552_p4, %p551_p2 }
 0x156   : > { %p549_p7 = pneg %p548_p6 }
 0x157   : > { %p555_p12 = por %p554_p8, %p553_p10 }
 0x159   : > { %p556_p0 = pnand %p555_p12, %p549_p7 }
 0x15b   : > { %559 = shalt.err (!%p556_p0)
}
 0x15c   : > { %s640_s4 = smov 128   ;;  %s641_s5 = smov 8  }
 0x15d   : > { %414 = dma.vmem_to_hbm [thread:$0]  (%p871_p9), %s808_s15, 256, %s806_s19, %s290_s24, %s640_s4, %s640_s4, %s641_s5  }
 0x15e PF: > { %p425_p11 = scmp.ge.s32.totalorder %s630_s13, 2  ;;  %s320_s9 = sand.u32 1, %s602_s6  }
 0x15f   : > { %p872_p13 = scmp.ne.s32.totalorder %s869_s25, 0  ;;  %s321_s10 = scalar_lea.sflag [#allocation4], %s320_s9 }
 0x161   : > { %p421_p1 = pnand %p425_p11, %p872_p13 }
 0x163   : > { %597 = dma.done.wait (!%p421_p1), %s321_s10, 256  }
 0x164   : > { %599 = vsyncadd (!%p421_p1), %s321_s10, 4294967040  ;;  %s17_s13 = sadd.s32 1, %s630_s13   ;;  %s873_s6 = smov %s606_s7 }
 0x165   : > { %p14_p3 = scmp.ge.s32.totalorder %s17_s13, 6   ;;  %s874_s7 = smov %s610_s8 }
 0x166   : > { %s875_s8 = smov %s730_s27  ;;  %s876_s9 = smov %s622_s11 }
 0x167   : > { %s877_s10 = smov %s626_s12  ;;  %s878_s11 = smov %s881_s16 }
 0x168   : > { %s879_s12 = smov %s885_s17  ;;  %16 = sbr.rel (!%p14_p3) target bundleno = 7 (0x7), region = 69 }
 0x16f   :  { %326 = vsyncpa [#allocation3], 1 }
 0x170   :  { %328 = vsyncpa [#allocation3 + $0x1], 1 }
 0x171   :  { %329 = vsyncpa [#allocation4], 1 }
 0x172   :  { %331 = vsyncpa [#allocation4 + $0x1], 1 }

</bundles_post_ra>
